<compile_context>
chip_gen: v6e
topology: v6e:2x2x1
jax: 0.10.0
libtpu: 0.0.40
codegen_flags: <defaults>
</compile_context>

<pallas_src>
import jax
import jax.numpy as jnp
from jax.experimental import pallas as pl
from jax.experimental.pallas import tpu as pltpu

N_OPS = 5
CIN = 7
COUT = 6


def _conv1x1_kernel(w_ref, bp_ref, x_ref, o_ref):
    # w_ref : (CIN, COUT)            f32 in SMEM  (last conv op's weights)
    # bp_ref: (COUT,)                f32 in SMEM  (bias + padding2 folded)
    # x_ref : (CIN, tm//128, 128)    f32 in VMEM  (channels-first dense slabs)
    # o_ref : (COUT, tm//128, 128)   f32 in VMEM
    x = x_ref[...]  # load once: CIN dense (tm//128, 128) slabs
    for c in range(COUT):
        acc = x[0] * w_ref[0, c] + bp_ref[c]
        for k in range(1, CIN):
            acc = acc + x[k] * w_ref[k, c]
        o_ref[c] = acc  # unmasked full-vreg stores per output channel


def model_forward(x_nchw, w_stack, b_stack, padding2, *, tm=None):
    """x_nchw: (N, CIN, H, W) f32; w_stack: (N_OPS, CIN, COUT); b_stack: (N_OPS, COUT).

    padding2 is modeled as a scalar added to the conv output (see TODO above).
    """
    N, C, H, W = x_nchw.shape
    assert C == CIN
    HW = H * W
    assert HW % 128 == 0, "spatial size must be lane-aligned (multiple of 128)"

    if tm is None:
        tm = HW
        # VMEM budget (matters on v7x's ~32 MiB scoped default): double-buffered
        # in+out blocks cost ~2*(CIN+COUT)*tm*4 bytes.  Cap tm if HW ever grows;
        # halving keeps divisibility and (tm//128) % 8 == 0 for the (8,128) rule.
        cap = 256 * 1024
        while tm > cap and tm % 2 == 0 and ((tm // 2) % 1024 == 0) and HW % (tm // 2) == 0:
            tm //= 2
    assert HW % tm == 0, "spatial size must tile evenly"
    assert tm % 128 == 0, "spatial tile must be lane-aligned"
    S = tm // 128
    assert tm == HW or S % 8 == 0, "block sublane dim must be a multiple of 8"

    # NCHW flattens to channels-first (N, CIN, HW//128, 128) with NO transpose
    # (contiguous reshape, free in HBM) -> dense (8,128) tiles in VMEM.
    x_tiled = x_nchw.reshape(N, CIN, HW // 128, 128).astype(jnp.float32)

    # Only the last op's result survives; fold bias + padding2 once.
    w_last = w_stack[-1].astype(jnp.float32)                      # (CIN, COUT)
    bp = (b_stack[-1].astype(jnp.float32)
          + jnp.float32(padding2)).reshape(COUT)                  # (COUT,)

    out_tiled = pl.pallas_call(
        _conv1x1_kernel,
        out_shape=jax.ShapeDtypeStruct((N, COUT, HW // 128, 128), jnp.float32),
        grid=(N, HW // tm),
        in_specs=[
            pl.BlockSpec(memory_space=pltpu.MemorySpace.SMEM),    # weights (scalars)
            pl.BlockSpec(memory_space=pltpu.MemorySpace.SMEM),    # bias + pad (scalars)
            pl.BlockSpec((None, CIN, S, 128), lambda n, j: (n, 0, j, 0)),
        ],
        out_specs=pl.BlockSpec((None, COUT, S, 128), lambda n, j: (n, 0, j, 0)),
        compiler_params=pltpu.CompilerParams(
            dimension_semantics=("parallel", "parallel")),
    )(w_last, bp, x_tiled)

    return out_tiled.reshape(N, COUT, H, W)


def reference_forward(x_nchw, w_stack, b_stack, padding2):
    # Pure-JAX reference: last conv op wins, 1x1 conv == channel matmul.
    N, C, H, W = x_nchw.shape
    xf = jnp.transpose(x_nchw, (0, 2, 3, 1)).reshape(-1, C)
    y = xf @ w_stack[-1] + b_stack[-1] + padding2
    return y.reshape(N, H, W, COUT).transpose(0, 3, 1, 2)


if __name__ == "__main__":
    key = jax.random.PRNGKey(0)
    kx, kw, kb = jax.random.split(key, 3)

    # input consistent with the module: (1, 7, 64, 64)
    x1 = jax.random.normal(kx, (1, CIN, 64, 64), dtype=jnp.float32)

    # deterministic Conv2d-style init: U(-1/sqrt(fan_in), 1/sqrt(fan_in))
    bound = 1.0 / jnp.sqrt(jnp.float32(CIN))
    w_stack = jax.random.uniform(kw, (N_OPS, CIN, COUT), jnp.float32, -bound, bound)
    b_stack = jax.random.uniform(kb, (N_OPS, COUT), jnp.float32, -bound, bound)

    padding2 = 0.5  # scalar stand-in for the invalid string default (see TODO)

    out = model_forward(x1, w_stack, b_stack, padding2)
    out = jax.block_until_ready(out)

    ref = reference_forward(x1, w_stack, b_stack, padding2)
    assert out.shape == (1, COUT, 64, 64)
    assert jnp.allclose(out, ref, atol=1e-5, rtol=1e-5), "mismatch vs reference"

    print("KERNEL_OK")
</pallas_src>

<mosaic_0001>
module attributes {stable_mosaic.version = 11 : i64} {
  func.func @_conv1x1_kernel(%arg0: i32, %arg1: i32, %arg2: memref<7x6xf32, #tpu.memory_space<smem>>, %arg3: memref<6xf32, #tpu.memory_space<smem>>, %arg4: memref<1x7x32x128xf32, #tpu.memory_space<vmem>>, %arg5: memref<1x6x32x128xf32, #tpu.memory_space<vmem>>) attributes {dimension_semantics = [#tpu.dimension_semantics<parallel>, #tpu.dimension_semantics<parallel>], iteration_bounds = array<i64: 1, 1>, scalar_prefetch = 0 : i64, scratch_operands = 0 : i64, tpu.core_type = #tpu.core_type<tc>, window_params = [{transform_indices = @transform_0, window_bounds = array<i64: 7, 6>}, {transform_indices = @transform_1, window_bounds = array<i64: 6>}, {transform_indices = @transform_2, window_bounds = array<i64: 1, 7, 32, 128>}, {transform_indices = @transform_3, window_bounds = array<i64: 1, 6, 32, 128>}]} {
    %c0 = arith.constant 0 : index
    %c0_0 = arith.constant 0 : index
    %c0_1 = arith.constant 0 : index
    %c0_2 = arith.constant 0 : index
    %0 = vector.load %arg4[%c0, %c0_0, %c0_1, %c0_2] : memref<1x7x32x128xf32, #tpu.memory_space<vmem>>, vector<1x7x32x128xf32>
    %1 = vector.shape_cast %0 : vector<1x7x32x128xf32> to vector<7x32x128xf32>
    %2 = vector.extract_strided_slice %1 {offsets = [0, 0, 0], sizes = [1, 32, 128], strides = [1, 1, 1]} : vector<7x32x128xf32> to vector<1x32x128xf32>
    %3 = vector.shape_cast %2 : vector<1x32x128xf32> to vector<32x128xf32>
    %c0_3 = arith.constant 0 : index
    %c0_4 = arith.constant 0 : index
    %4 = memref.load %arg2[%c0_3, %c0_4] : memref<7x6xf32, #tpu.memory_space<smem>>
    %5 = vector.broadcast %4 : f32 to vector<32x128xf32>
    %6 = arith.mulf %3, %5 : vector<32x128xf32>
    %c0_5 = arith.constant 0 : index
    %7 = memref.load %arg3[%c0_5] : memref<6xf32, #tpu.memory_space<smem>>
    %8 = vector.broadcast %7 : f32 to vector<32x128xf32>
    %9 = arith.addf %6, %8 : vector<32x128xf32>
    %10 = vector.extract_strided_slice %1 {offsets = [1, 0, 0], sizes = [1, 32, 128], strides = [1, 1, 1]} : vector<7x32x128xf32> to vector<1x32x128xf32>
    %11 = vector.shape_cast %10 : vector<1x32x128xf32> to vector<32x128xf32>
    %c1 = arith.constant 1 : index
    %c0_6 = arith.constant 0 : index
    %12 = memref.load %arg2[%c1, %c0_6] : memref<7x6xf32, #tpu.memory_space<smem>>
    %13 = vector.broadcast %12 : f32 to vector<32x128xf32>
    %14 = arith.mulf %11, %13 : vector<32x128xf32>
    %15 = arith.addf %9, %14 : vector<32x128xf32>
    %16 = vector.extract_strided_slice %1 {offsets = [2, 0, 0], sizes = [1, 32, 128], strides = [1, 1, 1]} : vector<7x32x128xf32> to vector<1x32x128xf32>
    %17 = vector.shape_cast %16 : vector<1x32x128xf32> to vector<32x128xf32>
    %c2 = arith.constant 2 : index
    %c0_7 = arith.constant 0 : index
    %18 = memref.load %arg2[%c2, %c0_7] : memref<7x6xf32, #tpu.memory_space<smem>>
    %19 = vector.broadcast %18 : f32 to vector<32x128xf32>
    %20 = arith.mulf %17, %19 : vector<32x128xf32>
    %21 = arith.addf %15, %20 : vector<32x128xf32>
    %22 = vector.extract_strided_slice %1 {offsets = [3, 0, 0], sizes = [1, 32, 128], strides = [1, 1, 1]} : vector<7x32x128xf32> to vector<1x32x128xf32>
    %23 = vector.shape_cast %22 : vector<1x32x128xf32> to vector<32x128xf32>
    %c3 = arith.constant 3 : index
    %c0_8 = arith.constant 0 : index
    %24 = memref.load %arg2[%c3, %c0_8] : memref<7x6xf32, #tpu.memory_space<smem>>
    %25 = vector.broadcast %24 : f32 to vector<32x128xf32>
    %26 = arith.mulf %23, %25 : vector<32x128xf32>
    %27 = arith.addf %21, %26 : vector<32x128xf32>
    %28 = vector.extract_strided_slice %1 {offsets = [4, 0, 0], sizes = [1, 32, 128], strides = [1, 1, 1]} : vector<7x32x128xf32> to vector<1x32x128xf32>
    %29 = vector.shape_cast %28 : vector<1x32x128xf32> to vector<32x128xf32>
    %c4 = arith.constant 4 : index
    %c0_9 = arith.constant 0 : index
    %30 = memref.load %arg2[%c4, %c0_9] : memref<7x6xf32, #tpu.memory_space<smem>>
    %31 = vector.broadcast %30 : f32 to vector<32x128xf32>
    %32 = arith.mulf %29, %31 : vector<32x128xf32>
    %33 = arith.addf %27, %32 : vector<32x128xf32>
    %34 = vector.extract_strided_slice %1 {offsets = [5, 0, 0], sizes = [1, 32, 128], strides = [1, 1, 1]} : vector<7x32x128xf32> to vector<1x32x128xf32>
    %35 = vector.shape_cast %34 : vector<1x32x128xf32> to vector<32x128xf32>
    %c5 = arith.constant 5 : index
    %c0_10 = arith.constant 0 : index
    %36 = memref.load %arg2[%c5, %c0_10] : memref<7x6xf32, #tpu.memory_space<smem>>
    %37 = vector.broadcast %36 : f32 to vector<32x128xf32>
    %38 = arith.mulf %35, %37 : vector<32x128xf32>
    %39 = arith.addf %33, %38 : vector<32x128xf32>
    %40 = vector.extract_strided_slice %1 {offsets = [6, 0, 0], sizes = [1, 32, 128], strides = [1, 1, 1]} : vector<7x32x128xf32> to vector<1x32x128xf32>
    %41 = vector.shape_cast %40 : vector<1x32x128xf32> to vector<32x128xf32>
    %c6 = arith.constant 6 : index
    %c0_11 = arith.constant 0 : index
    %42 = memref.load %arg2[%c6, %c0_11] : memref<7x6xf32, #tpu.memory_space<smem>>
    %43 = vector.broadcast %42 : f32 to vector<32x128xf32>
    %44 = arith.mulf %41, %43 : vector<32x128xf32>
    %45 = arith.addf %39, %44 : vector<32x128xf32>
    %c0_12 = arith.constant 0 : index
    %c0_13 = arith.constant 0 : index
    %c0_14 = arith.constant 0 : index
    %c0_15 = arith.constant 0 : index
    %46 = vector.load %arg5[%c0_12, %c0_13, %c0_14, %c0_15] : memref<1x6x32x128xf32, #tpu.memory_space<vmem>>, vector<1x1x32x128xf32>
    %47 = vector.shape_cast %46 : vector<1x1x32x128xf32> to vector<32x128xf32>
    %48 = vector.shape_cast %45 : vector<32x128xf32> to vector<1x1x32x128xf32>
    tpu.vector_store %arg5[%c0_12, %c0_13, %c0_14, %c0_15], %48 {strides = array<i32>} : memref<1x6x32x128xf32, #tpu.memory_space<vmem>>, vector<1x1x32x128xf32>,
    %49 = vector.extract_strided_slice %1 {offsets = [0, 0, 0], sizes = [1, 32, 128], strides = [1, 1, 1]} : vector<7x32x128xf32> to vector<1x32x128xf32>
    %50 = vector.shape_cast %49 : vector<1x32x128xf32> to vector<32x128xf32>
    %c0_16 = arith.constant 0 : index
    %c1_17 = arith.constant 1 : index
    %51 = memref.load %arg2[%c0_16, %c1_17] : memref<7x6xf32, #tpu.memory_space<smem>>
    %52 = vector.broadcast %51 : f32 to vector<32x128xf32>
    %53 = arith.mulf %50, %52 : vector<32x128xf32>
    %c1_18 = arith.constant 1 : index
    %54 = memref.load %arg3[%c1_18] : memref<6xf32, #tpu.memory_space<smem>>
    %55 = vector.broadcast %54 : f32 to vector<32x128xf32>
    %56 = arith.addf %53, %55 : vector<32x128xf32>
    %57 = vector.extract_strided_slice %1 {offsets = [1, 0, 0], sizes = [1, 32, 128], strides = [1, 1, 1]} : vector<7x32x128xf32> to vector<1x32x128xf32>
    %58 = vector.shape_cast %57 : vector<1x32x128xf32> to vector<32x128xf32>
    %c1_19 = arith.constant 1 : index
    %c1_20 = arith.constant 1 : index
    %59 = memref.load %arg2[%c1_19, %c1_20] : memref<7x6xf32, #tpu.memory_space<smem>>
    %60 = vector.broadcast %59 : f32 to vector<32x128xf32>
    %61 = arith.mulf %58, %60 : vector<32x128xf32>
    %62 = arith.addf %56, %61 : vector<32x128xf32>
    %63 = vector.extract_strided_slice %1 {offsets = [2, 0, 0], sizes = [1, 32, 128], strides = [1, 1, 1]} : vector<7x32x128xf32> to vector<1x32x128xf32>
    %64 = vector.shape_cast %63 : vector<1x32x128xf32> to vector<32x128xf32>
    %c2_21 = arith.constant 2 : index
    %c1_22 = arith.constant 1 : index
    %65 = memref.load %arg2[%c2_21, %c1_22] : memref<7x6xf32, #tpu.memory_space<smem>>
    %66 = vector.broadcast %65 : f32 to vector<32x128xf32>
    %67 = arith.mulf %64, %66 : vector<32x128xf32>
    %68 = arith.addf %62, %67 : vector<32x128xf32>
    %69 = vector.extract_strided_slice %1 {offsets = [3, 0, 0], sizes = [1, 32, 128], strides = [1, 1, 1]} : vector<7x32x128xf32> to vector<1x32x128xf32>
    %70 = vector.shape_cast %69 : vector<1x32x128xf32> to vector<32x128xf32>
    %c3_23 = arith.constant 3 : index
    %c1_24 = arith.constant 1 : index
    %71 = memref.load %arg2[%c3_23, %c1_24] : memref<7x6xf32, #tpu.memory_space<smem>>
    %72 = vector.broadcast %71 : f32 to vector<32x128xf32>
    %73 = arith.mulf %70, %72 : vector<32x128xf32>
    %74 = arith.addf %68, %73 : vector<32x128xf32>
    %75 = vector.extract_strided_slice %1 {offsets = [4, 0, 0], sizes = [1, 32, 128], strides = [1, 1, 1]} : vector<7x32x128xf32> to vector<1x32x128xf32>
    %76 = vector.shape_cast %75 : vector<1x32x128xf32> to vector<32x128xf32>
    %c4_25 = arith.constant 4 : index
    %c1_26 = arith.constant 1 : index
    %77 = memref.load %arg2[%c4_25, %c1_26] : memref<7x6xf32, #tpu.memory_space<smem>>
    %78 = vector.broadcast %77 : f32 to vector<32x128xf32>
    %79 = arith.mulf %76, %78 : vector<32x128xf32>
    %80 = arith.addf %74, %79 : vector<32x128xf32>
    %81 = vector.extract_strided_slice %1 {offsets = [5, 0, 0], sizes = [1, 32, 128], strides = [1, 1, 1]} : vector<7x32x128xf32> to vector<1x32x128xf32>
    %82 = vector.shape_cast %81 : vector<1x32x128xf32> to vector<32x128xf32>
    %c5_27 = arith.constant 5 : index
    %c1_28 = arith.constant 1 : index
    %83 = memref.load %arg2[%c5_27, %c1_28] : memref<7x6xf32, #tpu.memory_space<smem>>
    %84 = vector.broadcast %83 : f32 to vector<32x128xf32>
    %85 = arith.mulf %82, %84 : vector<32x128xf32>
    %86 = arith.addf %80, %85 : vector<32x128xf32>
    %87 = vector.extract_strided_slice %1 {offsets = [6, 0, 0], sizes = [1, 32, 128], strides = [1, 1, 1]} : vector<7x32x128xf32> to vector<1x32x128xf32>
    %88 = vector.shape_cast %87 : vector<1x32x128xf32> to vector<32x128xf32>
    %c6_29 = arith.constant 6 : index
    %c1_30 = arith.constant 1 : index
    %89 = memref.load %arg2[%c6_29, %c1_30] : memref<7x6xf32, #tpu.memory_space<smem>>
    %90 = vector.broadcast %89 : f32 to vector<32x128xf32>
    %91 = arith.mulf %88, %90 : vector<32x128xf32>
    %92 = arith.addf %86, %91 : vector<32x128xf32>
    %c0_31 = arith.constant 0 : index
    %c1_32 = arith.constant 1 : index
    %c0_33 = arith.constant 0 : index
    %c0_34 = arith.constant 0 : index
    %93 = vector.load %arg5[%c0_31, %c1_32, %c0_33, %c0_34] : memref<1x6x32x128xf32, #tpu.memory_space<vmem>>, vector<1x1x32x128xf32>
    %94 = vector.shape_cast %93 : vector<1x1x32x128xf32> to vector<32x128xf32>
    %95 = vector.shape_cast %92 : vector<32x128xf32> to vector<1x1x32x128xf32>
    tpu.vector_store %arg5[%c0_31, %c1_32, %c0_33, %c0_34], %95 {strides = array<i32>} : memref<1x6x32x128xf32, #tpu.memory_space<vmem>>, vector<1x1x32x128xf32>,
    %96 = vector.extract_strided_slice %1 {offsets = [0, 0, 0], sizes = [1, 32, 128], strides = [1, 1, 1]} : vector<7x32x128xf32> to vector<1x32x128xf32>
    %97 = vector.shape_cast %96 : vector<1x32x128xf32> to vector<32x128xf32>
    %c0_35 = arith.constant 0 : index
    %c2_36 = arith.constant 2 : index
    %98 = memref.load %arg2[%c0_35, %c2_36] : memref<7x6xf32, #tpu.memory_space<smem>>
    %99 = vector.broadcast %98 : f32 to vector<32x128xf32>
    %100 = arith.mulf %97, %99 : vector<32x128xf32>
    %c2_37 = arith.constant 2 : index
    %101 = memref.load %arg3[%c2_37] : memref<6xf32, #tpu.memory_space<smem>>
    %102 = vector.broadcast %101 : f32 to vector<32x128xf32>
    %103 = arith.addf %100, %102 : vector<32x128xf32>
    %104 = vector.extract_strided_slice %1 {offsets = [1, 0, 0], sizes = [1, 32, 128], strides = [1, 1, 1]} : vector<7x32x128xf32> to vector<1x32x128xf32>
    %105 = vector.shape_cast %104 : vector<1x32x128xf32> to vector<32x128xf32>
    %c1_38 = arith.constant 1 : index
    %c2_39 = arith.constant 2 : index
    %106 = memref.load %arg2[%c1_38, %c2_39] : memref<7x6xf32, #tpu.memory_space<smem>>
    %107 = vector.broadcast %106 : f32 to vector<32x128xf32>
    %108 = arith.mulf %105, %107 : vector<32x128xf32>
    %109 = arith.addf %103, %108 : vector<32x128xf32>
    %110 = vector.extract_strided_slice %1 {offsets = [2, 0, 0], sizes = [1, 32, 128], strides = [1, 1, 1]} : vector<7x32x128xf32> to vector<1x32x128xf32>
    %111 = vector.shape_cast %110 : vector<1x32x128xf32> to vector<32x128xf32>
    %c2_40 = arith.constant 2 : index
    %c2_41 = arith.constant 2 : index
    %112 = memref.load %arg2[%c2_40, %c2_41] : memref<7x6xf32, #tpu.memory_space<smem>>
    %113 = vector.broadcast %112 : f32 to vector<32x128xf32>
    %114 = arith.mulf %111, %113 : vector<32x128xf32>
    %115 = arith.addf %109, %114 : vector<32x128xf32>
    %116 = vector.extract_strided_slice %1 {offsets = [3, 0, 0], sizes = [1, 32, 128], strides = [1, 1, 1]} : vector<7x32x128xf32> to vector<1x32x128xf32>
    %117 = vector.shape_cast %116 : vector<1x32x128xf32> to vector<32x128xf32>
    %c3_42 = arith.constant 3 : index
    %c2_43 = arith.constant 2 : index
    %118 = memref.load %arg2[%c3_42, %c2_43] : memref<7x6xf32, #tpu.memory_space<smem>>
    %119 = vector.broadcast %118 : f32 to vector<32x128xf32>
    %120 = arith.mulf %117, %119 : vector<32x128xf32>
    %121 = arith.addf %115, %120 : vector<32x128xf32>
    %122 = vector.extract_strided_slice %1 {offsets = [4, 0, 0], sizes = [1, 32, 128], strides = [1, 1, 1]} : vector<7x32x128xf32> to vector<1x32x128xf32>
    %123 = vector.shape_cast %122 : vector<1x32x128xf32> to vector<32x128xf32>
    %c4_44 = arith.constant 4 : index
    %c2_45 = arith.constant 2 : index
    %124 = memref.load %arg2[%c4_44, %c2_45] : memref<7x6xf32, #tpu.memory_space<smem>>
    %125 = vector.broadcast %124 : f32 to vector<32x128xf32>
    %126 = arith.mulf %123, %125 : vector<32x128xf32>
    %127 = arith.addf %121, %126 : vector<32x128xf32>
    %128 = vector.extract_strided_slice %1 {offsets = [5, 0, 0], sizes = [1, 32, 128], strides = [1, 1, 1]} : vector<7x32x128xf32> to vector<1x32x128xf32>
    %129 = vector.shape_cast %128 : vector<1x32x128xf32> to vector<32x128xf32>
    %c5_46 = arith.constant 5 : index
    %c2_47 = arith.constant 2 : index
    %130 = memref.load %arg2[%c5_46, %c2_47] : memref<7x6xf32, #tpu.memory_space<smem>>
    %131 = vector.broadcast %130 : f32 to vector<32x128xf32>
    %132 = arith.mulf %129, %131 : vector<32x128xf32>
    %133 = arith.addf %127, %132 : vector<32x128xf32>
    %134 = vector.extract_strided_slice %1 {offsets = [6, 0, 0], sizes = [1, 32, 128], strides = [1, 1, 1]} : vector<7x32x128xf32> to vector<1x32x128xf32>
    %135 = vector.shape_cast %134 : vector<1x32x128xf32> to vector<32x128xf32>
    %c6_48 = arith.constant 6 : index
    %c2_49 = arith.constant 2 : index
    %136 = memref.load %arg2[%c6_48, %c2_49] : memref<7x6xf32, #tpu.memory_space<smem>>
    %137 = vector.broadcast %136 : f32 to vector<32x128xf32>
    %138 = arith.mulf %135, %137 : vector<32x128xf32>
    %139 = arith.addf %133, %138 : vector<32x128xf32>
    %c0_50 = arith.constant 0 : index
    %c2_51 = arith.constant 2 : index
    %c0_52 = arith.constant 0 : index
    %c0_53 = arith.constant 0 : index
    %140 = vector.load %arg5[%c0_50, %c2_51, %c0_52, %c0_53] : memref<1x6x32x128xf32, #tpu.memory_space<vmem>>, vector<1x1x32x128xf32>
    %141 = vector.shape_cast %140 : vector<1x1x32x128xf32> to vector<32x128xf32>
    %142 = vector.shape_cast %139 : vector<32x128xf32> to vector<1x1x32x128xf32>
    tpu.vector_store %arg5[%c0_50, %c2_51, %c0_52, %c0_53], %142 {strides = array<i32>} : memref<1x6x32x128xf32, #tpu.memory_space<vmem>>, vector<1x1x32x128xf32>,
    %143 = vector.extract_strided_slice %1 {offsets = [0, 0, 0], sizes = [1, 32, 128], strides = [1, 1, 1]} : vector<7x32x128xf32> to vector<1x32x128xf32>
    %144 = vector.shape_cast %143 : vector<1x32x128xf32> to vector<32x128xf32>
    %c0_54 = arith.constant 0 : index
    %c3_55 = arith.constant 3 : index
    %145 = memref.load %arg2[%c0_54, %c3_55] : memref<7x6xf32, #tpu.memory_space<smem>>
    %146 = vector.broadcast %145 : f32 to vector<32x128xf32>
    %147 = arith.mulf %144, %146 : vector<32x128xf32>
    %c3_56 = arith.constant 3 : index
    %148 = memref.load %arg3[%c3_56] : memref<6xf32, #tpu.memory_space<smem>>
    %149 = vector.broadcast %148 : f32 to vector<32x128xf32>
    %150 = arith.addf %147, %149 : vector<32x128xf32>
    %151 = vector.extract_strided_slice %1 {offsets = [1, 0, 0], sizes = [1, 32, 128], strides = [1, 1, 1]} : vector<7x32x128xf32> to vector<1x32x128xf32>
    %152 = vector.shape_cast %151 : vector<1x32x128xf32> to vector<32x128xf32>
    %c1_57 = arith.constant 1 : index
    %c3_58 = arith.constant 3 : index
    %153 = memref.load %arg2[%c1_57, %c3_58] : memref<7x6xf32, #tpu.memory_space<smem>>
    %154 = vector.broadcast %153 : f32 to vector<32x128xf32>
    %155 = arith.mulf %152, %154 : vector<32x128xf32>
    %156 = arith.addf %150, %155 : vector<32x128xf32>
    %157 = vector.extract_strided_slice %1 {offsets = [2, 0, 0], sizes = [1, 32, 128], strides = [1, 1, 1]} : vector<7x32x128xf32> to vector<1x32x128xf32>
    %158 = vector.shape_cast %157 : vector<1x32x128xf32> to vector<32x128xf32>
    %c2_59 = arith.constant 2 : index
    %c3_60 = arith.constant 3 : index
    %159 = memref.load %arg2[%c2_59, %c3_60] : memref<7x6xf32, #tpu.memory_space<smem>>
    %160 = vector.broadcast %159 : f32 to vector<32x128xf32>
    %161 = arith.mulf %158, %160 : vector<32x128xf32>
    %162 = arith.addf %156, %161 : vector<32x128xf32>
    %163 = vector.extract_strided_slice %1 {offsets = [3, 0, 0], sizes = [1, 32, 128], strides = [1, 1, 1]} : vector<7x32x128xf32> to vector<1x32x128xf32>
    %164 = vector.shape_cast %163 : vector<1x32x128xf32> to vector<32x128xf32>
    %c3_61 = arith.constant 3 : index
    %c3_62 = arith.constant 3 : index
    %165 = memref.load %arg2[%c3_61, %c3_62] : memref<7x6xf32, #tpu.memory_space<smem>>
    %166 = vector.broadcast %165 : f32 to vector<32x128xf32>
    %167 = arith.mulf %164, %166 : vector<32x128xf32>
    %168 = arith.addf %162, %167 : vector<32x128xf32>
    %169 = vector.extract_strided_slice %1 {offsets = [4, 0, 0], sizes = [1, 32, 128], strides = [1, 1, 1]} : vector<7x32x128xf32> to vector<1x32x128xf32>
    %170 = vector.shape_cast %169 : vector<1x32x128xf32> to vector<32x128xf32>
    %c4_63 = arith.constant 4 : index
    %c3_64 = arith.constant 3 : index
    %171 = memref.load %arg2[%c4_63, %c3_64] : memref<7x6xf32, #tpu.memory_space<smem>>
    %172 = vector.broadcast %171 : f32 to vector<32x128xf32>
    %173 = arith.mulf %170, %172 : vector<32x128xf32>
    %174 = arith.addf %168, %173 : vector<32x128xf32>
    %175 = vector.extract_strided_slice %1 {offsets = [5, 0, 0], sizes = [1, 32, 128], strides = [1, 1, 1]} : vector<7x32x128xf32> to vector<1x32x128xf32>
    %176 = vector.shape_cast %175 : vector<1x32x128xf32> to vector<32x128xf32>
    %c5_65 = arith.constant 5 : index
    %c3_66 = arith.constant 3 : index
    %177 = memref.load %arg2[%c5_65, %c3_66] : memref<7x6xf32, #tpu.memory_space<smem>>
    %178 = vector.broadcast %177 : f32 to vector<32x128xf32>
    %179 = arith.mulf %176, %178 : vector<32x128xf32>
    %180 = arith.addf %174, %179 : vector<32x128xf32>
    %181 = vector.extract_strided_slice %1 {offsets = [6, 0, 0], sizes = [1, 32, 128], strides = [1, 1, 1]} : vector<7x32x128xf32> to vector<1x32x128xf32>
    %182 = vector.shape_cast %181 : vector<1x32x128xf32> to vector<32x128xf32>
    %c6_67 = arith.constant 6 : index
    %c3_68 = arith.constant 3 : index
    %183 = memref.load %arg2[%c6_67, %c3_68] : memref<7x6xf32, #tpu.memory_space<smem>>
    %184 = vector.broadcast %183 : f32 to vector<32x128xf32>
    %185 = arith.mulf %182, %184 : vector<32x128xf32>
    %186 = arith.addf %180, %185 : vector<32x128xf32>
    %c0_69 = arith.constant 0 : index
    %c3_70 = arith.constant 3 : index
    %c0_71 = arith.constant 0 : index
    %c0_72 = arith.constant 0 : index
    %187 = vector.load %arg5[%c0_69, %c3_70, %c0_71, %c0_72] : memref<1x6x32x128xf32, #tpu.memory_space<vmem>>, vector<1x1x32x128xf32>
    %188 = vector.shape_cast %187 : vector<1x1x32x128xf32> to vector<32x128xf32>
    %189 = vector.shape_cast %186 : vector<32x128xf32> to vector<1x1x32x128xf32>
    tpu.vector_store %arg5[%c0_69, %c3_70, %c0_71, %c0_72], %189 {strides = array<i32>} : memref<1x6x32x128xf32, #tpu.memory_space<vmem>>, vector<1x1x32x128xf32>,
    %190 = vector.extract_strided_slice %1 {offsets = [0, 0, 0], sizes = [1, 32, 128], strides = [1, 1, 1]} : vector<7x32x128xf32> to vector<1x32x128xf32>
    %191 = vector.shape_cast %190 : vector<1x32x128xf32> to vector<32x128xf32>
    %c0_73 = arith.constant 0 : index
    %c4_74 = arith.constant 4 : index
    %192 = memref.load %arg2[%c0_73, %c4_74] : memref<7x6xf32, #tpu.memory_space<smem>>
    %193 = vector.broadcast %192 : f32 to vector<32x128xf32>
    %194 = arith.mulf %191, %193 : vector<32x128xf32>
    %c4_75 = arith.constant 4 : index
    %195 = memref.load %arg3[%c4_75] : memref<6xf32, #tpu.memory_space<smem>>
    %196 = vector.broadcast %195 : f32 to vector<32x128xf32>
    %197 = arith.addf %194, %196 : vector<32x128xf32>
    %198 = vector.extract_strided_slice %1 {offsets = [1, 0, 0], sizes = [1, 32, 128], strides = [1, 1, 1]} : vector<7x32x128xf32> to vector<1x32x128xf32>
    %199 = vector.shape_cast %198 : vector<1x32x128xf32> to vector<32x128xf32>
    %c1_76 = arith.constant 1 : index
    %c4_77 = arith.constant 4 : index
    %200 = memref.load %arg2[%c1_76, %c4_77] : memref<7x6xf32, #tpu.memory_space<smem>>
    %201 = vector.broadcast %200 : f32 to vector<32x128xf32>
    %202 = arith.mulf %199, %201 : vector<32x128xf32>
    %203 = arith.addf %197, %202 : vector<32x128xf32>
    %204 = vector.extract_strided_slice %1 {offsets = [2, 0, 0], sizes = [1, 32, 128], strides = [1, 1, 1]} : vector<7x32x128xf32> to vector<1x32x128xf32>
    %205 = vector.shape_cast %204 : vector<1x32x128xf32> to vector<32x128xf32>
    %c2_78 = arith.constant 2 : index
    %c4_79 = arith.constant 4 : index
    %206 = memref.load %arg2[%c2_78, %c4_79] : memref<7x6xf32, #tpu.memory_space<smem>>
    %207 = vector.broadcast %206 : f32 to vector<32x128xf32>
    %208 = arith.mulf %205, %207 : vector<32x128xf32>
    %209 = arith.addf %203, %208 : vector<32x128xf32>
    %210 = vector.extract_strided_slice %1 {offsets = [3, 0, 0], sizes = [1, 32, 128], strides = [1, 1, 1]} : vector<7x32x128xf32> to vector<1x32x128xf32>
    %211 = vector.shape_cast %210 : vector<1x32x128xf32> to vector<32x128xf32>
    %c3_80 = arith.constant 3 : index
    %c4_81 = arith.constant 4 : index
    %212 = memref.load %arg2[%c3_80, %c4_81] : memref<7x6xf32, #tpu.memory_space<smem>>
    %213 = vector.broadcast %212 : f32 to vector<32x128xf32>
    %214 = arith.mulf %211, %213 : vector<32x128xf32>
    %215 = arith.addf %209, %214 : vector<32x128xf32>
    %216 = vector.extract_strided_slice %1 {offsets = [4, 0, 0], sizes = [1, 32, 128], strides = [1, 1, 1]} : vector<7x32x128xf32> to vector<1x32x128xf32>
    %217 = vector.shape_cast %216 : vector<1x32x128xf32> to vector<32x128xf32>
    %c4_82 = arith.constant 4 : index
    %c4_83 = arith.constant 4 : index
    %218 = memref.load %arg2[%c4_82, %c4_83] : memref<7x6xf32, #tpu.memory_space<smem>>
    %219 = vector.broadcast %218 : f32 to vector<32x128xf32>
    %220 = arith.mulf %217, %219 : vector<32x128xf32>
    %221 = arith.addf %215, %220 : vector<32x128xf32>
    %222 = vector.extract_strided_slice %1 {offsets = [5, 0, 0], sizes = [1, 32, 128], strides = [1, 1, 1]} : vector<7x32x128xf32> to vector<1x32x128xf32>
    %223 = vector.shape_cast %222 : vector<1x32x128xf32> to vector<32x128xf32>
    %c5_84 = arith.constant 5 : index
    %c4_85 = arith.constant 4 : index
    %224 = memref.load %arg2[%c5_84, %c4_85] : memref<7x6xf32, #tpu.memory_space<smem>>
    %225 = vector.broadcast %224 : f32 to vector<32x128xf32>
    %226 = arith.mulf %223, %225 : vector<32x128xf32>
    %227 = arith.addf %221, %226 : vector<32x128xf32>
    %228 = vector.extract_strided_slice %1 {offsets = [6, 0, 0], sizes = [1, 32, 128], strides = [1, 1, 1]} : vector<7x32x128xf32> to vector<1x32x128xf32>
    %229 = vector.shape_cast %228 : vector<1x32x128xf32> to vector<32x128xf32>
    %c6_86 = arith.constant 6 : index
    %c4_87 = arith.constant 4 : index
    %230 = memref.load %arg2[%c6_86, %c4_87] : memref<7x6xf32, #tpu.memory_space<smem>>
    %231 = vector.broadcast %230 : f32 to vector<32x128xf32>
    %232 = arith.mulf %229, %231 : vector<32x128xf32>
    %233 = arith.addf %227, %232 : vector<32x128xf32>
    %c0_88 = arith.constant 0 : index
    %c4_89 = arith.constant 4 : index
    %c0_90 = arith.constant 0 : index
    %c0_91 = arith.constant 0 : index
    %234 = vector.load %arg5[%c0_88, %c4_89, %c0_90, %c0_91] : memref<1x6x32x128xf32, #tpu.memory_space<vmem>>, vector<1x1x32x128xf32>
    %235 = vector.shape_cast %234 : vector<1x1x32x128xf32> to vector<32x128xf32>
    %236 = vector.shape_cast %233 : vector<32x128xf32> to vector<1x1x32x128xf32>
    tpu.vector_store %arg5[%c0_88, %c4_89, %c0_90, %c0_91], %236 {strides = array<i32>} : memref<1x6x32x128xf32, #tpu.memory_space<vmem>>, vector<1x1x32x128xf32>,
    %237 = vector.extract_strided_slice %1 {offsets = [0, 0, 0], sizes = [1, 32, 128], strides = [1, 1, 1]} : vector<7x32x128xf32> to vector<1x32x128xf32>
    %238 = vector.shape_cast %237 : vector<1x32x128xf32> to vector<32x128xf32>
    %c0_92 = arith.constant 0 : index
    %c5_93 = arith.constant 5 : index
    %239 = memref.load %arg2[%c0_92, %c5_93] : memref<7x6xf32, #tpu.memory_space<smem>>
    %240 = vector.broadcast %239 : f32 to vector<32x128xf32>
    %241 = arith.mulf %238, %240 : vector<32x128xf32>
    %c5_94 = arith.constant 5 : index
    %242 = memref.load %arg3[%c5_94] : memref<6xf32, #tpu.memory_space<smem>>
    %243 = vector.broadcast %242 : f32 to vector<32x128xf32>
    %244 = arith.addf %241, %243 : vector<32x128xf32>
    %245 = vector.extract_strided_slice %1 {offsets = [1, 0, 0], sizes = [1, 32, 128], strides = [1, 1, 1]} : vector<7x32x128xf32> to vector<1x32x128xf32>
    %246 = vector.shape_cast %245 : vector<1x32x128xf32> to vector<32x128xf32>
    %c1_95 = arith.constant 1 : index
    %c5_96 = arith.constant 5 : index
    %247 = memref.load %arg2[%c1_95, %c5_96] : memref<7x6xf32, #tpu.memory_space<smem>>
    %248 = vector.broadcast %247 : f32 to vector<32x128xf32>
    %249 = arith.mulf %246, %248 : vector<32x128xf32>
    %250 = arith.addf %244, %249 : vector<32x128xf32>
    %251 = vector.extract_strided_slice %1 {offsets = [2, 0, 0], sizes = [1, 32, 128], strides = [1, 1, 1]} : vector<7x32x128xf32> to vector<1x32x128xf32>
    %252 = vector.shape_cast %251 : vector<1x32x128xf32> to vector<32x128xf32>
    %c2_97 = arith.constant 2 : index
    %c5_98 = arith.constant 5 : index
    %253 = memref.load %arg2[%c2_97, %c5_98] : memref<7x6xf32, #tpu.memory_space<smem>>
    %254 = vector.broadcast %253 : f32 to vector<32x128xf32>
    %255 = arith.mulf %252, %254 : vector<32x128xf32>
    %256 = arith.addf %250, %255 : vector<32x128xf32>
    %257 = vector.extract_strided_slice %1 {offsets = [3, 0, 0], sizes = [1, 32, 128], strides = [1, 1, 1]} : vector<7x32x128xf32> to vector<1x32x128xf32>
    %258 = vector.shape_cast %257 : vector<1x32x128xf32> to vector<32x128xf32>
    %c3_99 = arith.constant 3 : index
    %c5_100 = arith.constant 5 : index
    %259 = memref.load %arg2[%c3_99, %c5_100] : memref<7x6xf32, #tpu.memory_space<smem>>
    %260 = vector.broadcast %259 : f32 to vector<32x128xf32>
    %261 = arith.mulf %258, %260 : vector<32x128xf32>
    %262 = arith.addf %256, %261 : vector<32x128xf32>
    %263 = vector.extract_strided_slice %1 {offsets = [4, 0, 0], sizes = [1, 32, 128], strides = [1, 1, 1]} : vector<7x32x128xf32> to vector<1x32x128xf32>
    %264 = vector.shape_cast %263 : vector<1x32x128xf32> to vector<32x128xf32>
    %c4_101 = arith.constant 4 : index
    %c5_102 = arith.constant 5 : index
    %265 = memref.load %arg2[%c4_101, %c5_102] : memref<7x6xf32, #tpu.memory_space<smem>>
    %266 = vector.broadcast %265 : f32 to vector<32x128xf32>
    %267 = arith.mulf %264, %266 : vector<32x128xf32>
    %268 = arith.addf %262, %267 : vector<32x128xf32>
    %269 = vector.extract_strided_slice %1 {offsets = [5, 0, 0], sizes = [1, 32, 128], strides = [1, 1, 1]} : vector<7x32x128xf32> to vector<1x32x128xf32>
    %270 = vector.shape_cast %269 : vector<1x32x128xf32> to vector<32x128xf32>
    %c5_103 = arith.constant 5 : index
    %c5_104 = arith.constant 5 : index
    %271 = memref.load %arg2[%c5_103, %c5_104] : memref<7x6xf32, #tpu.memory_space<smem>>
    %272 = vector.broadcast %271 : f32 to vector<32x128xf32>
    %273 = arith.mulf %270, %272 : vector<32x128xf32>
    %274 = arith.addf %268, %273 : vector<32x128xf32>
    %275 = vector.extract_strided_slice %1 {offsets = [6, 0, 0], sizes = [1, 32, 128], strides = [1, 1, 1]} : vector<7x32x128xf32> to vector<1x32x128xf32>
    %276 = vector.shape_cast %275 : vector<1x32x128xf32> to vector<32x128xf32>
    %c6_105 = arith.constant 6 : index
    %c5_106 = arith.constant 5 : index
    %277 = memref.load %arg2[%c6_105, %c5_106] : memref<7x6xf32, #tpu.memory_space<smem>>
    %278 = vector.broadcast %277 : f32 to vector<32x128xf32>
    %279 = arith.mulf %276, %278 : vector<32x128xf32>
    %280 = arith.addf %274, %279 : vector<32x128xf32>
    %c0_107 = arith.constant 0 : index
    %c5_108 = arith.constant 5 : index
    %c0_109 = arith.constant 0 : index
    %c0_110 = arith.constant 0 : index
    %281 = vector.load %arg5[%c0_107, %c5_108, %c0_109, %c0_110] : memref<1x6x32x128xf32, #tpu.memory_space<vmem>>, vector<1x1x32x128xf32>
    %282 = vector.shape_cast %281 : vector<1x1x32x128xf32> to vector<32x128xf32>
    %283 = vector.shape_cast %280 : vector<32x128xf32> to vector<1x1x32x128xf32>
    tpu.vector_store %arg5[%c0_107, %c5_108, %c0_109, %c0_110], %283 {strides = array<i32>} : memref<1x6x32x128xf32, #tpu.memory_space<vmem>>, vector<1x1x32x128xf32>,
    return
  }
  func.func @transform_0(%arg0: i32, %arg1: i32) -> (i32, i32) {
    %c0_i32 = arith.constant 0 : i32
    %c0_i32_0 = arith.constant 0 : i32
    %c0_i32_1 = arith.constant 0 : i32
    return %c0_i32, %c0_i32_0 : i32, i32
  }
  func.func @transform_1(%arg0: i32, %arg1: i32) -> i32 {
    %c0_i32 = arith.constant 0 : i32
    %c0_i32_0 = arith.constant 0 : i32
    return %c0_i32 : i32
  }
  func.func @transform_2(%arg0: i32, %arg1: i32) -> (i32, i32, i32, i32) {
    %c0_i32 = arith.constant 0 : i32
    %c0_i32_0 = arith.constant 0 : i32
    %c0_i32_1 = arith.constant 0 : i32
    return %arg0, %c0_i32, %arg1, %c0_i32_0 : i32, i32, i32, i32
  }
  func.func @transform_3(%arg0: i32, %arg1: i32) -> (i32, i32, i32, i32) {
    %c0_i32 = arith.constant 0 : i32
    %c0_i32_0 = arith.constant 0 : i32
    %c0_i32_1 = arith.constant 0 : i32
    return %arg0, %c0_i32, %arg1, %c0_i32_0 : i32, i32, i32, i32
  }
}

</mosaic_0001>

<bundles_post_ra>
// kernel: tpu_custom_call.1
= control target key start
LH: loop header
LB: loop body
LE: loop exit
PB: predicated region body
PF: predicated region fallthrough
CT: control target
= control target key end

     0   :  { %8 = vsyncpa [#allocation5], 0  ;;  %s1167_s0 = inlined_call_operand.hbm [shape: f32[7,6], index: 0, kind: input, shape index: {}]   ;;  %s1168_s1 = inlined_call_operand.vmem [shape: f32[6], index: 1, kind: input, shape index: {}]   ;;  %s1169_s2 = inlined_call_operand.hbm [shape: f32[1,7,32,128], index: 2, kind: input, shape index: {}]   ;;  %s1170_s3 = inlined_call_operand.hbm [shape: f32[1,6,32,128], index: 3, kind: output, shape index: {}]  }
   0x1   :  { %9 = vsyncpa [#allocation6], 0 }
   0x2   :  { %10 = vsyncpa [#allocation3], 0 }
   0x3   :  { %11 = vsyncpa [#allocation4], 0  ;;  %s26_s14 = sshll.u32 %s1168_s1, 4  ;;  %s680_s15 = smov [#allocation2]   ;;  %s27_s14 = int_to_ptr.vmem [resolvable:$true] %s26_s14 }
   0x4   :  { %19 = dma.hbm_to_smem %s1167_s0, 128, %s680_s15, [#allocation5]  }
   0x5   :  { %s620_s18 = scalar_lea.vmem %s27_s14, 16  ;;  %p625_p1 = scmp.lt.s32.totalorder %s27_s14, %s27_s14 }
   0x6   :  { %p621_p0 = scmp.ne.s32.totalorder %s27_s14, %s620_s18  ;;  %p626_p2 = scmp.lt.s32.totalorder %s620_s18, %s620_s18 }
   0x8   :  { %p627_p3 = por %p626_p2, %p625_p1 }
   0xa   :  { %p628_p4 = pnand %p627_p3, %p621_p0 }
   0xc   :  { %631 = shalt.err (!%p628_p4)
}
   0xd   :  { %s681_s19 = smov [#allocation7]   ;;  %s682_s20 = smov [#allocation8]  }
   0xe   :  { %29 = dma.vmem_to_smem %s27_s14, 16, %s681_s19, [#allocation6]  }
   0xf   :  { %s35_s21 = sshll.u32 %s682_s20, 4  ;;  %s36_s21 = int_to_ptr.vmem [resolvable:$true] %s35_s21 }
  0x10   :  { %s640_s22 = scalar_lea.vmem %s36_s21, 3584  ;;  %p645_p6 = scmp.lt.s32.totalorder %s36_s21, %s36_s21 }
  0x11   :  { %p641_p5 = scmp.ne.s32.totalorder %s36_s21, %s640_s22  ;;  %p646_p7 = scmp.lt.s32.totalorder %s640_s22, %s640_s22 }
  0x13   :  { %p647_p8 = por %p646_p7, %p645_p6 }
  0x15   :  { %p648_p9 = pnand %p647_p8, %p641_p5 }
  0x17   :  { %651 = shalt.err (!%p648_p9)
}
  0x18   :  { %s683_s0 = smov 128   ;;  %s684_s1 = smov 8  }
  0x19   :  { %41 = dma.hbm_to_vmem [thread:$0]  %s1169_s2, 3584, %s36_s21, [#allocation3], %s683_s0, %s683_s0, %s684_s1  }
  0x1a   :  { %672 = dma.done.wait [#allocation5], 128  }
  0x1b   :  { %673 = vsyncadd [#allocation5], 4294967168 }
  0x1c   :  { %674 = dma.done.wait [#allocation6], 16  }
  0x1d   :  { %675 = vsyncadd [#allocation6], 4294967280 }
  0x1e   :  { %676 = dma.done.wait [#allocation3], 3584  }
  0x1f   :  { %677 = vsyncadd [#allocation3], 4294963712 }
  0x20   :  { %51 = sfence }
  0x21   :  { %s80_s25 = sld [smem:[#allocation2]]  ;;  %v718_v0 = vld [vmem:[#allocation8] sm:$0xff]  ;;  %v720_v1 = vld [vmem:[#allocation8 + $0x8] sm:$0xff]  ;;  %v724_v2 = vld [vmem:[#allocation8 + $0x10] sm:$0xff] }
  0x22   :  { %s86_s26 = sld [smem:[#allocation7]]  ;;  %v726_v3 = vld [vmem:[#allocation8 + $0x20] sm:$0xff]  ;;  %v737_v8 = vld [vmem:[#allocation8 + $0x28] sm:$0xff]  ;;  %v745_v14 = vld [vmem:[#allocation8 + $0x18] sm:$0xff] }
  0x23   :  { %s560_s27 = sld [smem:[#allocation2 + $0x80]]  ;;  %v730_v5 = vld [vmem:[#allocation8 + $0x40] sm:$0xff]  ;;  %v739_v9 = vld [vmem:[#allocation8 + $0x48] sm:$0xff]  ;;  %v777_v38 = vld [vmem:[#allocation8 + $0x30] sm:$0xff] }
  0x24   :  { %s561_s28 = sld [smem:[#allocation2 + $0x100]]  ;;  %v742_v11 = vld [vmem:[#allocation8 + $0x60] sm:$0xff]  ;;  %v751_v19 = vld [vmem:[#allocation8 + $0x68] sm:$0xff]  ;;  %v779_v39 = vld [vmem:[#allocation8 + $0x50] sm:$0xff] }
  0x25   :  { %s562_s29 = sld [smem:[#allocation2 + $0x180]]  ;;  %v747_v15 = vld [vmem:[#allocation8 + $0x80] sm:$0xff]  ;;  %v757_v24 = vld [vmem:[#allocation8 + $0x88] sm:$0xff]  ;;  %v786_v44 = vld [vmem:[#allocation8 + $0x70] sm:$0xff] }
  0x26   :  { %s722_s30 = sld [smem:[#allocation2 + $0x200]]  ;;  %v754_v21 = vld [vmem:[#allocation8 + $0xa0] sm:$0xff]  ;;  %v767_v31 = vld [vmem:[#allocation8 + $0xa8] sm:$0xff]  ;;  %v788_v45 = vld [vmem:[#allocation8 + $0x90] sm:$0xff] }
  0x27   :  { %v81_v4 = vstv %s80_s25  ;;  %s728_s2 = sld [smem:[#allocation2 + $0x280]]  ;;  %v763_v27 = vld [vmem:[#allocation8 + $0xc0] sm:$0xff]  ;;  %v774_v35 = vld [vmem:[#allocation8 + $0xc8] sm:$0xff]  ;;  %v790_v46 = vld [vmem:[#allocation8 + $0xb0] sm:$0xff] }
  0x28   :  { %v82_v6 = vmul.f32 %v81_v4, %v718_v0  ;;  %v733_v7 = vstv %s86_s26  ;;  %s735_s4 = sld [smem:[#allocation2 + $0x300]]  ;;  %v83_v10 = vmul.f32 %v81_v4, %v720_v1  ;;  %v84_v13 = vmul.f32 %v81_v4, %v724_v2  ;;  %v797_v51 = vld [vmem:[#allocation8 + $0x38] sm:$0xff]  ;;  %v802_v54 = vld [vmem:[#allocation8 + $0xd0] sm:$0xff] }
  0x29   :  { %v93_v12 = vstv %s560_s27  ;;  %s761_s5 = sld [smem:[#allocation2 + $0x1]]  ;;  %v85_v32 = vmul.f32 %v81_v4, %v745_v14  ;;  %v806_v57 = vld [vmem:[#allocation8 + $0x58] sm:$0xff] }
  0x2a   :  { %v88_v16 = vadd.f32 %v733_v7, %v82_v6  ;;  %v94_v17 = vmul.f32 %v93_v12, %v726_v3  ;;  %v103_v18 = vstv %s561_s28  ;;  %v89_v20 = vadd.f32 %v733_v7, %v83_v10  ;;  %s770_s6 = sld [smem:[#allocation7 + $0x1]]  ;;  %v808_v58 = vld [vmem:[#allocation8 + $0x78] sm:$0xff] }
  0x2b   :  { %v104_v22 = vmul.f32 %v103_v18, %v730_v5  ;;  %v113_v23 = vstv %s562_s29  ;;  %v95_v25 = vmul.f32 %v93_v12, %v737_v8  ;;  %v105_v26 = vmul.f32 %v103_v18, %v739_v9  ;;  %s781_s7 = sld [smem:[#allocation2 + $0x81]]  ;;  %v813_v63 = vld [vmem:[#allocation8 + $0x98] sm:$0xff] }
  0x2c   :  { %v98_v28 = vadd.f32 %v94_v17, %v88_v16  ;;  %v114_v29 = vmul.f32 %v113_v23, %v742_v11  ;;  %v123_v30 = vstv %s722_s30  ;;  %v115_v37 = vmul.f32 %v113_v23, %v751_v19  ;;  %s792_s8 = sld [smem:[#allocation2 + $0x101]]  ;;  %v817_v10 = vld [vmem:[#allocation8 + $0xb8] sm:$0xff] }
  0x2d   :  { %v124_v33 = vmul.f32 %v123_v30, %v747_v15  ;;  %v133_v34 = vstv %s728_s2  ;;  %v99_v36 = vadd.f32 %v95_v25, %v89_v20  ;;  %v125_v43 = vmul.f32 %v123_v30, %v757_v24  ;;  %s799_s9 = sld [smem:[#allocation2 + $0x181]] }
  0x2e   :  { %v108_v40 = vadd.f32 %v104_v22, %v98_v28  ;;  %v134_v41 = vmul.f32 %v133_v34, %v754_v21  ;;  %v143_v42 = vstv %s735_s4  ;;  %v135_v49 = vmul.f32 %v133_v34, %v767_v31  ;;  %s815_s10 = sld [smem:[#allocation2 + $0x201]] }
  0x2f   :  { %v144_v47 = vmul.f32 %v143_v42, %v763_v27  ;;  %v109_v48 = vadd.f32 %v105_v26, %v99_v36  ;;  %v90_v50 = vadd.f32 %v733_v7, %v84_v13  ;;  %v145_v53 = vmul.f32 %v143_v42, %v774_v35  ;;  %s821_s11 = sld [smem:[#allocation2 + $0x281]] }
  0x30   :  { %v118_v52 = vadd.f32 %v114_v29, %v108_v40  ;;  %v96_v55 = vmul.f32 %v93_v12, %v777_v38  ;;  %v106_v56 = vmul.f32 %v103_v18, %v779_v39  ;;  %v116_v60 = vmul.f32 %v113_v23, %v786_v44  ;;  %s826_s12 = sld [smem:[#allocation2 + $0x301]]  ;;  %v834_v40 = vld [vmem:[#allocation8 + $0xd8] sm:$0xff] }
  0x31   :  { %v119_v59 = vadd.f32 %v115_v37, %v109_v48  ;;  %v126_v61 = vmul.f32 %v123_v30, %v788_v45  ;;  %v136_v62 = vmul.f32 %v133_v34, %v790_v46  ;;  %v91_v13 = vadd.f32 %v733_v7, %v85_v32  ;;  %s849_s13 = sld [smem:[#allocation2 + $0x2]] }
  0x32   :  { %v128_v4 = vadd.f32 %v124_v33, %v118_v52  ;;  %v100_v6 = vadd.f32 %v96_v55, %v90_v50  ;;  %v97_v16 = vmul.f32 %v93_v12, %v797_v51  ;;  %v146_v20 = vmul.f32 %v143_v42, %v802_v54  ;;  %s856_s14 = sld [smem:[#allocation7 + $0x2]] }
  0x33   :  { %v129_v17 = vadd.f32 %v125_v43, %v119_v59  ;;  %v107_v22 = vmul.f32 %v103_v18, %v806_v57  ;;  %v117_v25 = vmul.f32 %v113_v23, %v808_v58  ;;  %v127_v7 = vmul.f32 %v123_v30, %v813_v63  ;;  %s859_s15 = sld [smem:[#allocation2 + $0x82]] }
  0x34   :  { %v138_v26 = vadd.f32 %v134_v41, %v128_v4  ;;  %v110_v28 = vadd.f32 %v106_v56, %v100_v6  ;;  %v101_v29 = vadd.f32 %v97_v16, %v91_v13  ;;  %v137_v32 = vmul.f32 %v133_v34, %v817_v10  ;;  %s867_s16 = sld [smem:[#allocation2 + $0x102]] }
  0x35   :  { %v139_v12 = vadd.f32 %v135_v49, %v129_v17  ;;  %v157_v33 = vstv %s761_s5  ;;  %v832_v36 = vstv %s770_s6  ;;  %v169_v48 = vstv %s781_s7  ;;  %s871_s17 = sld [smem:[#allocation2 + $0x182]] }
  0x36   :  { %v148_v37 = vadd.f32 %v144_v47, %v138_v26  ;;  %v120_v18 = vadd.f32 %v116_v60, %v110_v28  ;;  %v111_v23 = vadd.f32 %v107_v22, %v101_v29  ;;  %v158_v43 = vmul.f32 %v157_v33, %v718_v0  ;;  %s881_s18 = sld [smem:[#allocation2 + $0x202]] }
  0x37   :  { %v149_v41 = vadd.f32 %v145_v53, %v139_v12  ;;  %v179_v50 = vstv %s792_s8  ;;  %v189_v52 = vstv %s799_s9  ;;  %v170_v47 = vmul.f32 %v169_v48, %v726_v3  ;;  %s886_s19 = sld [smem:[#allocation2 + $0x282]] }
  0x38   :  { %152 = vst [vmem:[#allocation9] sm:$0xff] %v148_v37  ;;  %v130_v30 = vadd.f32 %v126_v61, %v120_v18  ;;  %v121_v34 = vadd.f32 %v117_v25, %v111_v23  ;;  %v164_v49 = vadd.f32 %v832_v36, %v158_v43  ;;  %v147_v55 = vmul.f32 %v143_v42, %v834_v40  ;;  %s893_s20 = sld [smem:[#allocation2 + $0x302]] }
  0x39   :  { %153 = vst [vmem:[#allocation9 + $0x8] sm:$0xff] %v149_v41  ;;  %v180_v56 = vmul.f32 %v179_v50, %v730_v5  ;;  %v190_v59 = vmul.f32 %v189_v52, %v742_v11  ;;  %v199_v53 = vstv %s815_s10  ;;  %v847_v13 = vstv %s821_s11  ;;  %s930_s21 = sld [smem:[#allocation2 + $0x3]] }
  0x3a   :  { %v140_v60 = vadd.f32 %v136_v62, %v130_v30  ;;  %v131_v4 = vadd.f32 %v127_v7, %v121_v34  ;;  %v174_v6 = vadd.f32 %v170_v47, %v164_v49  ;;  %v852_v61 = vstv %s826_s12  ;;  %s936_s22 = sld [smem:[#allocation7 + $0x3]] }
  0x3b   :  { %v159_v16 = vmul.f32 %v157_v33, %v720_v1  ;;  %v171_v17 = vmul.f32 %v169_v48, %v737_v8  ;;  %v200_v26 = vmul.f32 %v199_v53, %v747_v15  ;;  %v210_v62 = vmul.f32 %v847_v13, %v754_v21  ;;  %s942_s23 = sld [smem:[#allocation2 + $0x83]] }
  0x3c   :  { %v150_v42 = vadd.f32 %v146_v20, %v140_v60  ;;  %v141_v22 = vadd.f32 %v137_v32, %v131_v4  ;;  %v184_v25 = vadd.f32 %v180_v56, %v174_v6  ;;  %v220_v28 = vmul.f32 %v852_v61, %v763_v27  ;;  %s947_s24 = sld [smem:[#allocation2 + $0x103]] }
  0x3d   :  { %v165_v29 = vadd.f32 %v832_v36, %v159_v16  ;;  %v181_v7 = vmul.f32 %v179_v50, %v739_v9  ;;  %v191_v32 = vmul.f32 %v189_v52, %v751_v19  ;;  %v201_v37 = vmul.f32 %v199_v53, %v757_v24  ;;  %s953_s25 = sld [smem:[#allocation2 + $0x183]] }
  0x3e   :  { %154 = vst [vmem:[#allocation9 + $0x10] sm:$0xff] %v150_v42  ;;  %v151_v20 = vadd.f32 %v147_v55, %v141_v22  ;;  %v194_v12 = vadd.f32 %v190_v59, %v184_v25  ;;  %v211_v23 = vmul.f32 %v847_v13, %v767_v31  ;;  %v160_v43 = vmul.f32 %v157_v33, %v724_v2  ;;  %s959_s26 = sld [smem:[#allocation2 + $0x203]] }
  0x3f   :  { %v175_v18 = vadd.f32 %v171_v17, %v165_v29  ;;  %v172_v41 = vmul.f32 %v169_v48, %v777_v38  ;;  %v221_v34 = vmul.f32 %v852_v61, %v774_v35  ;;  %v182_v49 = vmul.f32 %v179_v50, %v779_v39  ;;  %s966_s27 = sld [smem:[#allocation2 + $0x283]] }
  0x40   :  { %155 = vst [vmem:[#allocation9 + $0x18] sm:$0xff] %v151_v20  ;;  %v204_v30 = vadd.f32 %v200_v26, %v194_v12  ;;  %v192_v47 = vmul.f32 %v189_v52, %v786_v44  ;;  %v166_v56 = vadd.f32 %v832_v36, %v160_v43  ;;  %v202_v59 = vmul.f32 %v199_v53, %v788_v45  ;;  %s971_s28 = sld [smem:[#allocation2 + $0x303]] }
  0x41   :  { %v185_v55 = vadd.f32 %v181_v7, %v175_v18  ;;  %v161_v60 = vmul.f32 %v157_v33, %v745_v14  ;;  %v212_v6 = vmul.f32 %v847_v13, %v790_v46  ;;  %v222_v16 = vmul.f32 %v852_v61, %v802_v54  ;;  %s1006_s29 = sld [smem:[#allocation2 + $0x4]] }
  0x42   :  { %v214_v4 = vadd.f32 %v210_v62, %v204_v30  ;;  %v173_v17 = vmul.f32 %v169_v48, %v797_v51  ;;  %v176_v22 = vadd.f32 %v172_v41, %v166_v56  ;;  %v183_v25 = vmul.f32 %v179_v50, %v806_v57  ;;  %s1011_s30 = sld [smem:[#allocation7 + $0x4]] }
  0x43   :  { %v195_v42 = vadd.f32 %v191_v32, %v185_v55  ;;  %v167_v33 = vadd.f32 %v832_v36, %v161_v60  ;;  %v193_v62 = vmul.f32 %v189_v52, %v808_v58  ;;  %v203_v29 = vmul.f32 %v199_v53, %v813_v63  ;;  %s1017_s2 = sld [smem:[#allocation2 + $0x84]] }
  0x44   :  { %v224_v26 = vadd.f32 %v220_v28, %v214_v4  ;;  %v234_v7 = vstv %s849_s13  ;;  %v186_v48 = vadd.f32 %v182_v49, %v176_v22  ;;  %v902_v32 = vstv %s856_s14  ;;  %s1021_s4 = sld [smem:[#allocation2 + $0x104]] }
  0x45   :  { %v205_v20 = vadd.f32 %v201_v37, %v195_v42  ;;  %v177_v12 = vadd.f32 %v173_v17, %v167_v33  ;;  %v235_v18 = vmul.f32 %v234_v7, %v718_v0  ;;  %v246_v43 = vstv %s859_s15  ;;  %s1027_s5 = sld [smem:[#allocation2 + $0x184]] }
  0x46   :  { %229 = vst [vmem:[#allocation9 + $0x20] sm:$0xff] %v224_v26  ;;  %v906_v36 = vstv %s867_s16  ;;  %v909_v50 = vstv %s871_s17  ;;  %v196_v28 = vadd.f32 %v192_v47, %v186_v48  ;;  %v213_v41 = vmul.f32 %v847_v13, %v817_v10  ;;  %s1032_s6 = sld [smem:[#allocation2 + $0x204]]  ;;  %s685_s17 = smov [#allocation9]  }
  0x47   :  { %v215_v52 = vadd.f32 %v211_v23, %v205_v20  ;;  %v187_v53 = vadd.f32 %v183_v25, %v177_v12  ;;  %v241_v37 = vadd.f32 %v902_v32, %v235_v18  ;;  %v247_v30 = vmul.f32 %v246_v43, %v726_v3  ;;  %s1041_s7 = sld [smem:[#allocation2 + $0x284]] }
  0x48   :  { %v257_v49 = vmul.f32 %v906_v36, %v730_v5  ;;  %v276_v55 = vstv %s881_s18  ;;  %v206_v60 = vadd.f32 %v202_v59, %v196_v28  ;;  %v267_v17 = vmul.f32 %v909_v50, %v742_v11  ;;  %s1047_s8 = sld [smem:[#allocation2 + $0x304]]  ;;  %s546_s18 = sshll.u32 %s685_s17, 4  ;;  %s547_s18 = int_to_ptr.vmem [resolvable:$true] %s546_s18 }
  0x49   :  { %v225_v56 = vadd.f32 %v221_v34, %v215_v52  ;;  %v197_v4 = vadd.f32 %v193_v62, %v187_v53  ;;  %v251_v23 = vadd.f32 %v247_v30, %v241_v37  ;;  %v921_v47 = vstv %s886_s19  ;;  %s1076_s9 = sld [smem:[#allocation2 + $0x5]]  ;;  %s652_s19 = scalar_lea.vmem %s547_s18, 3072 }
  0x4a   :  { %v924_v42 = vstv %s893_s20  ;;  %v236_v22 = vmul.f32 %v234_v7, %v720_v1  ;;  %v216_v13 = vadd.f32 %v212_v6, %v206_v60  ;;  %v223_v25 = vmul.f32 %v852_v61, %v834_v40  ;;  %s1081_s10 = sld [smem:[#allocation7 + $0x5]]  ;;  %p653_p10 = scmp.ne.s32.totalorder %s547_s18, %s652_s19 }
  0x4b   :  { %230 = vst [vmem:[#allocation9 + $0x28] sm:$0xff] %v225_v56  ;;  %v207_v33 = vadd.f32 %v203_v29, %v197_v4  ;;  %v277_v34 = vmul.f32 %v276_v55, %v747_v15  ;;  %v261_v59 = vadd.f32 %v257_v49, %v251_v23  ;;  %v248_v62 = vmul.f32 %v246_v43, %v737_v8  ;;  %s1085_s11 = sld [smem:[#allocation2 + $0x85]]  ;;  %p657_p11 = scmp.lt.s32.totalorder %s547_s18, %s547_s18 }
  0x4c   :  { %v242_v26 = vadd.f32 %v902_v32, %v236_v22  ;;  %v258_v20 = vmul.f32 %v906_v36, %v739_v9  ;;  %v226_v48 = vadd.f32 %v222_v16, %v216_v13  ;;  %v287_v29 = vmul.f32 %v921_v47, %v754_v21  ;;  %s1090_s12 = sld [smem:[#allocation2 + $0x105]]  ;;  %p658_p12 = scmp.lt.s32.totalorder %s652_s19, %s652_s19 }
  0x4d   :  { %v217_v6 = vadd.f32 %v213_v41, %v207_v33  ;;  %v297_v61 = vmul.f32 %v924_v42, %v763_v27  ;;  %v271_v12 = vadd.f32 %v267_v17, %v261_v59  ;;  %v268_v52 = vmul.f32 %v909_v50, %v751_v19  ;;  %s1095_s13 = sld [smem:[#allocation2 + $0x185]] }
  0x4e   :  { %v252_v18 = vadd.f32 %v248_v62, %v242_v26  ;;  %v278_v28 = vmul.f32 %v276_v55, %v757_v24  ;;  %231 = vst [vmem:[#allocation9 + $0x30] sm:$0xff] %v226_v48  ;;  %v288_v53 = vmul.f32 %v921_v47, %v767_v31  ;;  %v237_v37 = vmul.f32 %v234_v7, %v724_v2  ;;  %s1101_s14 = sld [smem:[#allocation2 + $0x205]]  ;;  %p659_p13 = por %p658_p12, %p657_p11 }
  0x4f   :  { %v227_v16 = vadd.f32 %v223_v25, %v217_v6  ;;  %v249_v41 = vmul.f32 %v246_v43, %v777_v38  ;;  %v281_v30 = vadd.f32 %v277_v34, %v271_v12  ;;  %v298_v56 = vmul.f32 %v924_v42, %v774_v35  ;;  %s1113_s15 = sld [smem:[#allocation2 + $0x285]] }
  0x50   :  { %v262_v49 = vadd.f32 %v258_v20, %v252_v18  ;;  %v259_v60 = vmul.f32 %v906_v36, %v779_v39  ;;  %v243_v4 = vadd.f32 %v902_v32, %v237_v37  ;;  %v269_v17 = vmul.f32 %v909_v50, %v786_v44  ;;  %s1119_s16 = sld [smem:[#allocation2 + $0x305]]  ;;  %p660_p0 = pnand %p659_p13, %p653_p10 }
  0x51   :  { %232 = vst [vmem:[#allocation9 + $0x38] sm:$0xff] %v227_v16  ;;  %v279_v23 = vmul.f32 %v276_v55, %v788_v45  ;;  %v238_v22 = vmul.f32 %v234_v7, %v745_v14  ;;  %v291_v13 = vadd.f32 %v287_v29, %v281_v30  ;;  %v289_v25 = vmul.f32 %v921_v47, %v790_v46 }
  0x52   :  { %v272_v33 = vadd.f32 %v268_v52, %v262_v49  ;;  %v250_v34 = vmul.f32 %v246_v43, %v797_v51  ;;  %v253_v59 = vadd.f32 %v249_v41, %v243_v4  ;;  %v299_v26 = vmul.f32 %v924_v42, %v802_v54 }
  0x53   :  { %v244_v7 = vadd.f32 %v902_v32, %v238_v22  ;;  %v260_v62 = vmul.f32 %v906_v36, %v806_v57  ;;  %v301_v20 = vadd.f32 %v297_v61, %v291_v13  ;;  %v270_v6 = vmul.f32 %v909_v50, %v808_v58 }
  0x54   :  { %v282_v48 = vadd.f32 %v278_v28, %v272_v33  ;;  %v280_v43 = vmul.f32 %v276_v55, %v813_v63  ;;  %v263_v29 = vadd.f32 %v259_v60, %v253_v59  ;;  %v311_v18 = vstv %s930_s21 }
  0x55   :  { %v254_v12 = vadd.f32 %v250_v34, %v244_v7  ;;  %v983_v52 = vstv %s936_s22  ;;  %306 = vst [vmem:[#allocation9 + $0x40] sm:$0xff] %v301_v20  ;;  %v312_v32 = vmul.f32 %v311_v18, %v718_v0  ;;  %v323_v37 = vstv %s942_s23 }
  0x56   :  { %v292_v16 = vadd.f32 %v288_v53, %v282_v48  ;;  %v333_v36 = vstv %s947_s24  ;;  %v273_v61 = vadd.f32 %v269_v17, %v263_v29  ;;  %v324_v50 = vmul.f32 %v323_v37, %v726_v3 }
  0x57   :  { %v264_v28 = vadd.f32 %v260_v62, %v254_v12  ;;  %v334_v55 = vmul.f32 %v333_v36, %v730_v5  ;;  %v318_v30 = vadd.f32 %v983_v52, %v312_v32  ;;  %v343_v49 = vstv %s953_s25 }
  0x58   :  { %v302_v41 = vadd.f32 %v298_v56, %v292_v16  ;;  %v353_v60 = vstv %s959_s26  ;;  %v283_v4 = vadd.f32 %v279_v23, %v273_v61  ;;  %v290_v53 = vmul.f32 %v921_v47, %v817_v10 }
  0x59   :  { %v274_v22 = vadd.f32 %v270_v6, %v264_v28  ;;  %v344_v13 = vmul.f32 %v343_v49, %v742_v11  ;;  %v328_v33 = vadd.f32 %v324_v50, %v318_v30  ;;  %v997_v17 = vstv %s966_s27 }
  0x5a   :  { %307 = vst [vmem:[#allocation9 + $0x48] sm:$0xff] %v302_v41  ;;  %v1000_v34 = vstv %s971_s28  ;;  %v313_v59 = vmul.f32 %v311_v18, %v720_v1  ;;  %v293_v56 = vadd.f32 %v289_v25, %v283_v4  ;;  %v300_v62 = vmul.f32 %v924_v42, %v834_v40 }
  0x5b   :  { %v284_v7 = vadd.f32 %v280_v43, %v274_v22  ;;  %v354_v23 = vmul.f32 %v353_v60, %v747_v15  ;;  %v338_v47 = vadd.f32 %v334_v55, %v328_v33  ;;  %v325_v48 = vmul.f32 %v323_v37, %v737_v8 }
  0x5c   :  { %v319_v20 = vadd.f32 %v983_v52, %v313_v59  ;;  %v335_v6 = vmul.f32 %v333_v36, %v739_v9  ;;  %v303_v29 = vadd.f32 %v299_v26, %v293_v56  ;;  %v364_v25 = vmul.f32 %v997_v17, %v754_v21 }
  0x5d   :  { %v294_v12 = vadd.f32 %v290_v53, %v284_v7  ;;  %v374_v42 = vmul.f32 %v1000_v34, %v763_v27  ;;  %v348_v43 = vadd.f32 %v344_v13, %v338_v47  ;;  %v345_v32 = vmul.f32 %v343_v49, %v751_v19 }
  0x5e   :  { %v329_v16 = vadd.f32 %v325_v48, %v319_v20  ;;  %v355_v61 = vmul.f32 %v353_v60, %v757_v24  ;;  %308 = vst [vmem:[#allocation9 + $0x50] sm:$0xff] %v303_v29  ;;  %v365_v26 = vmul.f32 %v997_v17, %v767_v31  ;;  %v314_v50 = vmul.f32 %v311_v18, %v724_v2 }
  0x5f   :  { %v304_v28 = vadd.f32 %v300_v62, %v294_v12  ;;  %v326_v55 = vmul.f32 %v323_v37, %v777_v38  ;;  %v358_v41 = vadd.f32 %v354_v23, %v348_v43  ;;  %v375_v4 = vmul.f32 %v1000_v34, %v774_v35 }
  0x60   :  { %v339_v30 = vadd.f32 %v335_v6, %v329_v16  ;;  %v336_v22 = vmul.f32 %v333_v36, %v779_v39  ;;  %v320_v53 = vadd.f32 %v983_v52, %v314_v50  ;;  %v346_v13 = vmul.f32 %v343_v49, %v786_v44 }
  0x61   :  { %309 = vst [vmem:[#allocation9 + $0x58] sm:$0xff] %v304_v28  ;;  %v356_v33 = vmul.f32 %v353_v60, %v788_v45  ;;  %v315_v59 = vmul.f32 %v311_v18, %v745_v14  ;;  %v368_v56 = vadd.f32 %v364_v25, %v358_v41  ;;  %v366_v62 = vmul.f32 %v997_v17, %v790_v46 }
  0x62   :  { %v349_v7 = vadd.f32 %v345_v32, %v339_v30  ;;  %v327_v23 = vmul.f32 %v323_v37, %v797_v51  ;;  %v330_v47 = vadd.f32 %v326_v55, %v320_v53  ;;  %v376_v20 = vmul.f32 %v1000_v34, %v802_v54 }
  0x63   :  { %v321_v48 = vadd.f32 %v983_v52, %v315_v59  ;;  %v337_v18 = vmul.f32 %v333_v36, %v806_v57  ;;  %v378_v6 = vadd.f32 %v374_v42, %v368_v56  ;;  %v347_v12 = vmul.f32 %v343_v49, %v808_v58 }
  0x64   :  { %v359_v29 = vadd.f32 %v355_v61, %v349_v7  ;;  %v357_v37 = vmul.f32 %v353_v60, %v813_v63  ;;  %v340_v25 = vadd.f32 %v336_v22, %v330_v47  ;;  %v388_v16 = vstv %s1006_s29 }
  0x65   :  { %v331_v43 = vadd.f32 %v327_v23, %v321_v48  ;;  %v1053_v32 = vstv %s1011_s30  ;;  %383 = vst [vmem:[#allocation9 + $0x60] sm:$0xff] %v378_v6  ;;  %v389_v52 = vmul.f32 %v388_v16, %v718_v0  ;;  %v400_v36 = vstv %s1017_s2 }
  0x66   :  { %v369_v28 = vadd.f32 %v365_v26, %v359_v29  ;;  %v410_v50 = vstv %s1021_s4  ;;  %v350_v42 = vadd.f32 %v346_v13, %v340_v25  ;;  %v401_v49 = vmul.f32 %v400_v36, %v726_v3 }
  0x67   :  { %v341_v61 = vadd.f32 %v337_v18, %v331_v43  ;;  %v411_v60 = vmul.f32 %v410_v50, %v730_v5  ;;  %v395_v41 = vadd.f32 %v1053_v32, %v389_v52  ;;  %v420_v30 = vstv %s1027_s5 }
  0x68   :  { %v379_v55 = vadd.f32 %v375_v4, %v369_v28  ;;  %v430_v22 = vstv %s1032_s6  ;;  %v360_v53 = vadd.f32 %v356_v33, %v350_v42  ;;  %v367_v26 = vmul.f32 %v997_v17, %v817_v10 }
  0x69   :  { %v351_v59 = vadd.f32 %v347_v12, %v341_v61  ;;  %v377_v56 = vmul.f32 %v1000_v34, %v834_v40  ;;  %v405_v13 = vadd.f32 %v401_v49, %v395_v41  ;;  %v421_v7 = vmul.f32 %v420_v30, %v742_v11 }
  0x6a   :  { %384 = vst [vmem:[#allocation9 + $0x68] sm:$0xff] %v379_v55  ;;  %v1069_v23 = vstv %s1041_s7  ;;  %v390_v4 = vmul.f32 %v388_v16, %v720_v1  ;;  %v370_v47 = vadd.f32 %v366_v62, %v360_v53  ;;  %v431_v18 = vmul.f32 %v430_v22, %v747_v15 }
  0x6b   :  { %v361_v48 = vadd.f32 %v357_v37, %v351_v59  ;;  %v1074_v33 = vstv %s1047_s8  ;;  %v415_v17 = vadd.f32 %v411_v60, %v405_v13  ;;  %v402_v34 = vmul.f32 %v400_v36, %v737_v8 }
  0x6c   :  { %v396_v6 = vadd.f32 %v1053_v32, %v390_v4  ;;  %v412_v29 = vmul.f32 %v410_v50, %v739_v9  ;;  %v380_v12 = vadd.f32 %v376_v20, %v370_v47  ;;  %v441_v62 = vmul.f32 %v1069_v23, %v754_v21 }
  0x6d   :  { %v371_v25 = vadd.f32 %v367_v26, %v361_v48  ;;  %v425_v37 = vadd.f32 %v421_v7, %v415_v17  ;;  %v451_v43 = vmul.f32 %v1074_v33, %v763_v27  ;;  %v422_v52 = vmul.f32 %v420_v30, %v751_v19 }
  0x6e   :  { %v406_v28 = vadd.f32 %v402_v34, %v396_v6  ;;  %385 = vst [vmem:[#allocation9 + $0x70] sm:$0xff] %v380_v12  ;;  %v432_v61 = vmul.f32 %v430_v22, %v757_v24  ;;  %v391_v20 = vmul.f32 %v388_v16, %v724_v2  ;;  %v403_v49 = vmul.f32 %v400_v36, %v777_v38 }
  0x6f   :  { %v381_v42 = vadd.f32 %v377_v56, %v371_v25  ;;  %v435_v60 = vadd.f32 %v431_v18, %v425_v37  ;;  %v442_v41 = vmul.f32 %v1069_v23, %v767_v31  ;;  %v452_v53 = vmul.f32 %v1074_v33, %v774_v35 }
  0x70   :  { %v416_v55 = vadd.f32 %v412_v29, %v406_v28  ;;  %v397_v59 = vadd.f32 %v1053_v32, %v391_v20  ;;  %v413_v26 = vmul.f32 %v410_v50, %v779_v39  ;;  %v423_v56 = vmul.f32 %v420_v30, %v786_v44 }
  0x71   :  { %386 = vst [vmem:[#allocation9 + $0x78] sm:$0xff] %v381_v42  ;;  %v392_v13 = vmul.f32 %v388_v16, %v745_v14  ;;  %v445_v7 = vadd.f32 %v441_v62, %v435_v60  ;;  %v433_v47 = vmul.f32 %v430_v22, %v788_v45  ;;  %v404_v48 = vmul.f32 %v400_v36, %v797_v51 }
  0x72   :  { %v426_v4 = vadd.f32 %v422_v52, %v416_v55  ;;  %v407_v18 = vadd.f32 %v403_v49, %v397_v59  ;;  %v443_v17 = vmul.f32 %v1069_v23, %v790_v46  ;;  %v414_v34 = vmul.f32 %v410_v50, %v806_v57 }
  0x73   :  { %v398_v6 = vadd.f32 %v1053_v32, %v392_v13  ;;  %v455_v16 = vadd.f32 %v451_v43, %v445_v7  ;;  %v424_v12 = vmul.f32 %v420_v30, %v808_v58  ;;  %v434_v25 = vmul.f32 %v430_v22, %v813_v63 }
  0x74   :  { %v436_v29 = vadd.f32 %v432_v61, %v426_v4  ;;  %v417_v62 = vadd.f32 %v413_v26, %v407_v18  ;;  %v465_v37 = vstv %s1076_s9  ;;  %v471_v28 = vstv %s1081_s10 }
  0x75   :  { %v408_v36 = vadd.f32 %v404_v48, %v398_v6  ;;  %460 = vst [vmem:[#allocation9 + $0x80] sm:$0xff] %v455_v16  ;;  %v466_v50 = vmul.f32 %v465_v37, %v718_v0  ;;  %v477_v52 = vstv %s1085_s11  ;;  %v487_v42 = vstv %s1090_s12 }
  0x76   :  { %v446_v32 = vadd.f32 %v442_v41, %v436_v29  ;;  %v427_v43 = vadd.f32 %v423_v56, %v417_v62  ;;  %v478_v30 = vmul.f32 %v477_v52, %v726_v3  ;;  %v488_v22 = vmul.f32 %v487_v42, %v730_v5 }
  0x77   :  { %v418_v61 = vadd.f32 %v414_v34, %v408_v36  ;;  %v472_v49 = vadd.f32 %v471_v28, %v466_v50  ;;  %v497_v60 = vstv %s1095_s13  ;;  %v507_v55 = vstv %s1101_s14 }
  0x78   :  { %v456_v20 = vadd.f32 %v452_v53, %v446_v32  ;;  %v437_v59 = vadd.f32 %v433_v47, %v427_v43  ;;  %v453_v26 = vmul.f32 %v1074_v33, %v802_v54  ;;  %v444_v0 = vmul.f32 %v1069_v23, %v817_v10 }
  0x79   :  { %v428_v41 = vadd.f32 %v424_v12, %v418_v61  ;;  %v454_v3 = vmul.f32 %v1074_v33, %v834_v40  ;;  %v482_v56 = vadd.f32 %v478_v30, %v472_v49  ;;  %v498_v5 = vmul.f32 %v497_v60, %v742_v11 }
  0x7a   :  { %461 = vst [vmem:[#allocation9 + $0x88] sm:$0xff] %v456_v20  ;;  %v467_v53 = vmul.f32 %v465_v37, %v720_v1  ;;  %v447_v13 = vadd.f32 %v443_v17, %v437_v59  ;;  %v508_v4 = vmul.f32 %v507_v55, %v747_v15  ;;  %v517_v47 = vstv %s1113_s15 }
  0x7b   :  { %v438_v7 = vadd.f32 %v434_v25, %v428_v41  ;;  %v492_v48 = vadd.f32 %v488_v22, %v482_v56  ;;  %v479_v6 = vmul.f32 %v477_v52, %v737_v8  ;;  %v489_v23 = vmul.f32 %v487_v42, %v739_v9 }
  0x7c   :  { %v473_v18 = vadd.f32 %v471_v28, %v467_v53  ;;  %v457_v34 = vadd.f32 %v453_v26, %v447_v13  ;;  %v527_v29 = vstv %s1119_s16  ;;  %v518_v12 = vmul.f32 %v517_v47, %v754_v21 }
  0x7d   :  { %v448_v16 = vadd.f32 %v444_v0, %v438_v7  ;;  %v502_v33 = vadd.f32 %v498_v5, %v492_v48  ;;  %v499_v1 = vmul.f32 %v497_v60, %v751_v19  ;;  %v468_v15 = vmul.f32 %v465_v37, %v724_v2 }
  0x7e   :  { %v483_v11 = vadd.f32 %v479_v6, %v473_v18  ;;  %462 = vst [vmem:[#allocation9 + $0x90] sm:$0xff] %v457_v34  ;;  %v480_v25 = vmul.f32 %v477_v52, %v777_v38  ;;  %v528_v8 = vmul.f32 %v527_v29, %v763_v27  ;;  %v509_v9 = vmul.f32 %v507_v55, %v757_v24 }
  0x7f   :  { %v458_v17 = vadd.f32 %v454_v3, %v448_v16  ;;  %v512_v62 = vadd.f32 %v508_v4, %v502_v33  ;;  %v474_v32 = vadd.f32 %v471_v28, %v468_v15  ;;  %v490_v50 = vmul.f32 %v487_v42, %v779_v39 }
  0x80   :  { %v493_v36 = vadd.f32 %v489_v23, %v483_v11  ;;  %v469_v21 = vmul.f32 %v465_v37, %v745_v14  ;;  %v519_v61 = vmul.f32 %v517_v47, %v767_v31  ;;  %v481_v2 = vmul.f32 %v477_v52, %v797_v51 }
  0x81   :  { %463 = vst [vmem:[#allocation9 + $0x98] sm:$0xff] %v458_v17  ;;  %v522_v43 = vadd.f32 %v518_v12, %v512_v62  ;;  %v484_v30 = vadd.f32 %v480_v25, %v474_v32  ;;  %v500_v38 = vmul.f32 %v497_v60, %v786_v44  ;;  %v491_v27 = vmul.f32 %v487_v42, %v806_v57 }
  0x82   :  { %v503_v19 = vadd.f32 %v499_v1, %v493_v36  ;;  %v475_v22 = vadd.f32 %v471_v28, %v469_v21  ;;  %v529_v49 = vmul.f32 %v527_v29, %v774_v35  ;;  %v510_v39 = vmul.f32 %v507_v55, %v788_v45 }
  0x83   :  { %v532_v20 = vadd.f32 %v528_v8, %v522_v43  ;;  %v494_v59 = vadd.f32 %v490_v50, %v484_v30  ;;  %v501_v37 = vmul.f32 %v497_v60, %v808_v58  ;;  %v520_v51 = vmul.f32 %v517_v47, %v790_v46 }
  0x84   :  { %v513_v24 = vadd.f32 %v509_v9, %v503_v19  ;;  %v485_v14 = vadd.f32 %v481_v2, %v475_v22  ;;  %v511_v44 = vmul.f32 %v507_v55, %v813_v63  ;;  %v530_v42 = vmul.f32 %v527_v29, %v802_v54 }
  0x85   :  { %537 = vst [vmem:[#allocation9 + $0xa0] sm:$0xff] %v532_v20  ;;  %v504_v26 = vadd.f32 %v500_v38, %v494_v59  ;;  %v521_v35 = vmul.f32 %v517_v47, %v817_v10  ;;  %v531_v58 = vmul.f32 %v527_v29, %v834_v40 }
  0x86   :  { %v523_v31 = vadd.f32 %v519_v61, %v513_v24  ;;  %v495_v52 = vadd.f32 %v491_v27, %v485_v14 }
  0x87   :  { %v514_v57 = vadd.f32 %v510_v39, %v504_v26 }
  0x88   :  { %v533_v28 = vadd.f32 %v529_v49, %v523_v31  ;;  %v505_v41 = vadd.f32 %v501_v37, %v495_v52 }
  0x89   :  { %v524_v45 = vadd.f32 %v520_v51, %v514_v57 }
  0x8a   :  { %538 = vst [vmem:[#allocation9 + $0xa8] sm:$0xff] %v533_v28  ;;  %v515_v0 = vadd.f32 %v511_v44, %v505_v41 }
  0x8b   :  { %v534_v60 = vadd.f32 %v530_v42, %v524_v45 }
  0x8c   :  { %v525_v3 = vadd.f32 %v521_v35, %v515_v0 }
  0x8d   :  { %539 = vst [vmem:[#allocation9 + $0xb0] sm:$0xff] %v534_v60 }
  0x8e   :  { %v535_v46 = vadd.f32 %v531_v58, %v525_v3 }
  0x90   :  { %540 = vst [vmem:[#allocation9 + $0xb8] sm:$0xff] %v535_v46 }
  0x91   :  { %663 = shalt.err (!%p660_p0)
}
  0x92   :  { %552 = dma.vmem_to_hbm [thread:$0]  %s547_s18, 3072, %s1170_s3, [#allocation4], %s683_s0, %s683_s0, %s684_s1  }
  0x93   :  { %678 = dma.done.wait [#allocation4], 3072  }
  0x94   :  { %679 = vsyncadd [#allocation4], 4294964224 }
  0x95   :  { %556 = vsyncpa [#allocation3], 1 }
  0x96   :  { %557 = vsyncpa [#allocation4], 1 }
  0x97   :  { %558 = vsyncpa [#allocation5], 1 }
  0x98   :  { %559 = vsyncpa [#allocation6], 1 }

</bundles_post_ra>
